<compile_context>
chip_gen: v5e
topology: v5e:2x2
jax: 0.10.0
libtpu: 0.0.40
codegen_flags: <defaults>
</compile_context>

<pallas_src>
import jax
import jax.numpy as jnp
from jax.experimental import pallas as pl
from jax.experimental.pallas import tpu as pltpu

LANE = 128
H1_PAD = 512   # 400 -> 512 (128-multiple; two full 256-wide MXU passes)
H2_PAD = 384   # 300 -> 384 (128-multiple; 256+128 on v6e/v7x, 3x128 on v5e)


def _round_up(n, m):
    return ((n + m - 1) // m) * m


def _actor_kernel(ab_ref, x_ref, w1_ref, b1_ref, w2_ref, b2_ref, w3_ref,
                  b3_ref, o_ref):
    ab = ab_ref[0, 0]
    # Layer 1: bf16 MXU matmul, f32 accumulate; bias/ReLU in f32.
    h1 = jnp.dot(x_ref[...], w1_ref[...],
                 preferred_element_type=jnp.float32) + b1_ref[...]
    h1 = jnp.maximum(h1, 0.0)
    # Layer 2
    h2 = jnp.dot(h1.astype(jnp.bfloat16), w2_ref[...],
                 preferred_element_type=jnp.float32) + b2_ref[...]
    h2 = jnp.maximum(h2, 0.0)
    # Layer 3 + tanh + scale (elementwise kept in f32 for v5e VPU/EUP)
    out = jnp.dot(h2.astype(jnp.bfloat16), w3_ref[...],
                  preferred_element_type=jnp.float32) + b3_ref[...]
    o_ref[...] = (jnp.tanh(out) * ab).astype(o_ref.dtype)


def actor_forward(state, padded_params, action_bound, action_dim, *, tb=1024):
    """state: [B, state_dim] f32.  Returns [B, action_dim] f32."""
    w1, b1, w2, b2, w3, b3 = padded_params
    B, SD = state.shape
    SDp = w1.shape[0]     # padded state dim (128-multiple)
    AP = w3.shape[1]      # padded action dim (128-multiple)

    # Batch tile: multiple of 8 sublanes, capped by the (rounded) batch.
    B8 = _round_up(B, 8)
    TB = min(tb, B8)
    # v7x has 2 TensorCores: once the batch is big enough to matter, keep at
    # least 2 "parallel" grid steps so the second core isn't idle.
    if B8 >= 1024 and pl.cdiv(B8, TB) < 2:
        TB = _round_up(pl.cdiv(B8, 2), 8)
    grid = (pl.cdiv(B, TB),)

    # Feature-dim pad + bf16 cast in the wrapper (no batch-dim pad: the
    # partial last batch block is masked by Pallas on store).
    x = state.astype(jnp.bfloat16)
    if SDp != SD:
        x = jnp.pad(x, ((0, 0), (0, SDp - SD)))
    ab = jnp.full((1, 1), action_bound, jnp.float32)

    def resident(shape):
        # Full-array block, constant index_map -> stays in VMEM across tiles.
        return pl.BlockSpec(shape, lambda i: (0, 0))

    param_bytes = sum(int(p.size) * p.dtype.itemsize for p in padded_params)
    flops = 2 * B * (SDp * H1_PAD + H1_PAD * H2_PAD + H2_PAD * AP)
    bytes_accessed = int(x.size) * 2 + B * AP * 4 + param_bytes

    # VMEM budget: double-buffered x/out tiles + f32 h1/h2 slabs + weights
    # (default 2-deep buffering on the resident blocks too).  Explicit limit
    # keeps v7x (64 MiB physical / 32 MiB default scoped) happy.
    vmem_est = (2 * TB * SDp * 2                # bf16 state tile, 2 buffers
                + 2 * TB * AP * 4               # f32 out tile, 2 buffers
                + TB * (H1_PAD + H2_PAD) * 4    # f32 intermediates
                + 2 * param_bytes)
    vmem_limit = int(min(64 * 1024 * 1024,
                         max(32 * 1024 * 1024, 2 * vmem_est)))

    out = pl.pallas_call(
        _actor_kernel,
        out_shape=jax.ShapeDtypeStruct((B, AP), jnp.float32),
        grid=grid,
        in_specs=[
            pl.BlockSpec(memory_space=pltpu.MemorySpace.SMEM),   # action_bound
            pl.BlockSpec((TB, SDp), lambda i: (i, 0)),           # state tile
            resident(w1.shape), resident(b1.shape),
            resident(w2.shape), resident(b2.shape),
            resident(w3.shape), resident(b3.shape),
        ],
        out_specs=pl.BlockSpec((TB, AP), lambda i: (i, 0)),
        compiler_params=pltpu.CompilerParams(
            dimension_semantics=("parallel",),
            vmem_limit_bytes=vmem_limit),
        cost_estimate=pl.CostEstimate(
            flops=flops,
            transcendentals=B * AP,          # tanh
            bytes_accessed=bytes_accessed),
    )(ab, x, w1, b1, w2, b2, w3, b3)

    return out[:, :action_dim]


def init_actor_params(key, state_dim, action_dim):
    """PyTorch-default-style init (uniform +-1/sqrt(fan_in)).
    Returns unpadded f32 params, weights stored [in, out], biases [1, out]."""
    dims = [(state_dim, 400), (400, 300), (300, action_dim)]
    params = []
    for fan_in, fan_out in dims:
        key, kw, kb = jax.random.split(key, 3)
        bound = 1.0 / (float(fan_in) ** 0.5)
        w = jax.random.uniform(kw, (fan_in, fan_out), jnp.float32,
                               minval=-bound, maxval=bound)
        b = jax.random.uniform(kb, (1, fan_out), jnp.float32,
                               minval=-bound, maxval=bound)
        params.extend([w, b])
    return tuple(params)


def pad_actor_params(params, state_dim, action_dim):
    """Zero-pad to MXU/lane-aligned shapes; weights cast to bf16, biases f32."""
    w1, b1, w2, b2, w3, b3 = params
    SDp = _round_up(state_dim, LANE)
    AP = _round_up(action_dim, LANE)

    def pad(a, rows, cols, dtype):
        out = jnp.zeros((rows, cols), dtype)
        return out.at[:a.shape[0], :a.shape[1]].set(a.astype(dtype))

    return (pad(w1, SDp, H1_PAD, jnp.bfloat16), pad(b1, 1, H1_PAD, jnp.float32),
            pad(w2, H1_PAD, H2_PAD, jnp.bfloat16), pad(b2, 1, H2_PAD, jnp.float32),
            pad(w3, H2_PAD, AP, jnp.bfloat16), pad(b3, 1, AP, jnp.float32))


def actor_reference(state, params, action_bound):
    """Plain-JAX f32 reference (unpadded params)."""
    w1, b1, w2, b2, w3, b3 = params
    h1 = jnp.maximum(state @ w1 + b1, 0.0)
    h2 = jnp.maximum(h1 @ w2 + b2, 0.0)
    return jnp.tanh(h2 @ w3 + b3) * action_bound


if __name__ == "__main__":
    # Small deterministic shapes consistent with the module's forward
    # (state_dim / action_dim come from the env in the original script).
    B, state_dim, action_dim = 8, 32, 8
    action_bound = 1.0

    key = jax.random.PRNGKey(0)
    key, kx = jax.random.split(key)
    state = jax.random.normal(kx, (B, state_dim), jnp.float32)

    params = init_actor_params(key, state_dim, action_dim)
    padded_params = pad_actor_params(params, state_dim, action_dim)

    out = actor_forward(state, padded_params, action_bound, action_dim)
    out = jax.block_until_ready(out)

    ref = actor_reference(state, params, action_bound)
    assert out.shape == (B, action_dim)
    # Tolerance loosened vs. pure-f32 because weights/activations are bf16.
    assert jnp.allclose(out, ref, atol=5e-2, rtol=5e-2), (
        float(jnp.max(jnp.abs(out - ref))))

    print("KERNEL_OK")
</pallas_src>

<mosaic_0001>
module attributes {stable_mosaic.version = 11 : i64} {
  func.func @_actor_kernel(%arg0: i32, %arg1: memref<1x1xf32, #tpu.memory_space<smem>>, %arg2: memref<8x128xbf16, #tpu.memory_space<vmem>>, %arg3: memref<128x512xbf16, #tpu.memory_space<vmem>>, %arg4: memref<1x512xf32, #tpu.memory_space<vmem>>, %arg5: memref<512x384xbf16, #tpu.memory_space<vmem>>, %arg6: memref<1x384xf32, #tpu.memory_space<vmem>>, %arg7: memref<384x128xbf16, #tpu.memory_space<vmem>>, %arg8: memref<1x128xf32, #tpu.memory_space<vmem>>, %arg9: memref<8x128xf32, #tpu.memory_space<vmem>>) attributes {dimension_semantics = [#tpu.dimension_semantics<parallel>], iteration_bounds = array<i64: 1>, scalar_prefetch = 0 : i64, scratch_operands = 0 : i64, tpu.core_type = #tpu.core_type<tc>, window_params = [{transform_indices = @transform_0, window_bounds = array<i64: 1, 1>}, {transform_indices = @transform_1, window_bounds = array<i64: 8, 128>}, {pipeline_mode = #tpu.pipeline_mode<synchronous>, transform_indices = @transform_2, window_bounds = array<i64: 128, 512>}, {pipeline_mode = #tpu.pipeline_mode<synchronous>, transform_indices = @transform_3, window_bounds = array<i64: 1, 512>}, {pipeline_mode = #tpu.pipeline_mode<synchronous>, transform_indices = @transform_4, window_bounds = array<i64: 512, 384>}, {pipeline_mode = #tpu.pipeline_mode<synchronous>, transform_indices = @transform_5, window_bounds = array<i64: 1, 384>}, {pipeline_mode = #tpu.pipeline_mode<synchronous>, transform_indices = @transform_6, window_bounds = array<i64: 384, 128>}, {pipeline_mode = #tpu.pipeline_mode<synchronous>, transform_indices = @transform_7, window_bounds = array<i64: 1, 128>}, {transform_indices = @transform_8, window_bounds = array<i64: 8, 128>}]} {
    %c0 = arith.constant 0 : index
    %c0_0 = arith.constant 0 : index
    %0 = memref.load %arg1[%c0, %c0_0] : memref<1x1xf32, #tpu.memory_space<smem>>
    %c0_1 = arith.constant 0 : index
    %c0_2 = arith.constant 0 : index
    %1 = vector.load %arg2[%c0_1, %c0_2] : memref<8x128xbf16, #tpu.memory_space<vmem>>, vector<8x128xbf16>
    %c0_3 = arith.constant 0 : index
    %c0_4 = arith.constant 0 : index
    %2 = vector.load %arg3[%c0_3, %c0_4] : memref<128x512xbf16, #tpu.memory_space<vmem>>, vector<128x512xbf16>
    %cst = arith.constant dense<0.000000e+00> : vector<8x512xf32>
    %3 = tpu.matmul %1, %2, %cst {dimension_numbers = #tpu.dot_dimension_numbers<[1], [0], [0], [1], [0, 0, 1, 1], [], []>} : vector<8x128xbf16>, vector<128x512xbf16>, vector<8x512xf32> -> vector<8x512xf32>
    %c0_5 = arith.constant 0 : index
    %c0_6 = arith.constant 0 : index
    %4 = vector.load %arg4[%c0_5, %c0_6] : memref<1x512xf32, #tpu.memory_space<vmem>>, vector<1x512xf32>
    %5 = vector.broadcast %4 : vector<1x512xf32> to vector<8x512xf32>
    %6 = arith.addf %3, %5 : vector<8x512xf32>
    %cst_7 = arith.constant 0.000000e+00 : f32
    %7 = vector.broadcast %cst_7 : f32 to vector<8x512xf32>
    %8 = arith.maximumf %6, %7 : vector<8x512xf32>
    %9 = arith.truncf %8 : vector<8x512xf32> to vector<8x512xbf16>
    %c0_8 = arith.constant 0 : index
    %c0_9 = arith.constant 0 : index
    %10 = vector.load %arg5[%c0_8, %c0_9] : memref<512x384xbf16, #tpu.memory_space<vmem>>, vector<512x384xbf16>
    %cst_10 = arith.constant dense<0.000000e+00> : vector<8x384xf32>
    %11 = tpu.matmul %9, %10, %cst_10 {dimension_numbers = #tpu.dot_dimension_numbers<[1], [0], [0], [1], [0, 0, 1, 1], [], []>} : vector<8x512xbf16>, vector<512x384xbf16>, vector<8x384xf32> -> vector<8x384xf32>
    %c0_11 = arith.constant 0 : index
    %c0_12 = arith.constant 0 : index
    %12 = vector.load %arg6[%c0_11, %c0_12] : memref<1x384xf32, #tpu.memory_space<vmem>>, vector<1x384xf32>
    %13 = vector.broadcast %12 : vector<1x384xf32> to vector<8x384xf32>
    %14 = arith.addf %11, %13 : vector<8x384xf32>
    %cst_13 = arith.constant 0.000000e+00 : f32
    %15 = vector.broadcast %cst_13 : f32 to vector<8x384xf32>
    %16 = arith.maximumf %14, %15 : vector<8x384xf32>
    %17 = arith.truncf %16 : vector<8x384xf32> to vector<8x384xbf16>
    %c0_14 = arith.constant 0 : index
    %c0_15 = arith.constant 0 : index
    %18 = vector.load %arg7[%c0_14, %c0_15] : memref<384x128xbf16, #tpu.memory_space<vmem>>, vector<384x128xbf16>
    %cst_16 = arith.constant dense<0.000000e+00> : vector<8x128xf32>
    %19 = tpu.matmul %17, %18, %cst_16 {dimension_numbers = #tpu.dot_dimension_numbers<[1], [0], [0], [1], [0, 0, 1, 1], [], []>} : vector<8x384xbf16>, vector<384x128xbf16>, vector<8x128xf32> -> vector<8x128xf32>
    %c0_17 = arith.constant 0 : index
    %c0_18 = arith.constant 0 : index
    %20 = vector.load %arg8[%c0_17, %c0_18] : memref<1x128xf32, #tpu.memory_space<vmem>>, vector<1x128xf32>
    %21 = vector.broadcast %20 : vector<1x128xf32> to vector<8x128xf32>
    %22 = arith.addf %19, %21 : vector<8x128xf32>
    %23 = math.tanh %22 : vector<8x128xf32>
    %24 = vector.broadcast %0 : f32 to vector<8x128xf32>
    %25 = arith.mulf %23, %24 : vector<8x128xf32>
    %c0_19 = arith.constant 0 : index
    %c0_20 = arith.constant 0 : index
    %26 = vector.load %arg9[%c0_19, %c0_20] : memref<8x128xf32, #tpu.memory_space<vmem>>, vector<8x128xf32>
    tpu.vector_store %arg9[%c0_19, %c0_20], %25 {strides = array<i32>} : memref<8x128xf32, #tpu.memory_space<vmem>>, vector<8x128xf32>,
    return
  }
  func.func @transform_0(%arg0: i32) -> (i32, i32) {
    %c0_i32 = arith.constant 0 : i32
    %c0_i32_0 = arith.constant 0 : i32
    %c0_i32_1 = arith.constant 0 : i32
    return %c0_i32, %c0_i32_0 : i32, i32
  }
  func.func @transform_1(%arg0: i32) -> (i32, i32) {
    %c0_i32 = arith.constant 0 : i32
    %c0_i32_0 = arith.constant 0 : i32
    return %arg0, %c0_i32 : i32, i32
  }
  func.func @transform_2(%arg0: i32) -> (i32, i32) {
    %c0_i32 = arith.constant 0 : i32
    %c0_i32_0 = arith.constant 0 : i32
    %c0_i32_1 = arith.constant 0 : i32
    return %c0_i32, %c0_i32_0 : i32, i32
  }
  func.func @transform_3(%arg0: i32) -> (i32, i32) {
    %c0_i32 = arith.constant 0 : i32
    %c0_i32_0 = arith.constant 0 : i32
    %c0_i32_1 = arith.constant 0 : i32
    return %c0_i32, %c0_i32_0 : i32, i32
  }
  func.func @transform_4(%arg0: i32) -> (i32, i32) {
    %c0_i32 = arith.constant 0 : i32
    %c0_i32_0 = arith.constant 0 : i32
    %c0_i32_1 = arith.constant 0 : i32
    return %c0_i32, %c0_i32_0 : i32, i32
  }
  func.func @transform_5(%arg0: i32) -> (i32, i32) {
    %c0_i32 = arith.constant 0 : i32
    %c0_i32_0 = arith.constant 0 : i32
    %c0_i32_1 = arith.constant 0 : i32
    return %c0_i32, %c0_i32_0 : i32, i32
  }
  func.func @transform_6(%arg0: i32) -> (i32, i32) {
    %c0_i32 = arith.constant 0 : i32
    %c0_i32_0 = arith.constant 0 : i32
    %c0_i32_1 = arith.constant 0 : i32
    return %c0_i32, %c0_i32_0 : i32, i32
  }
  func.func @transform_7(%arg0: i32) -> (i32, i32) {
    %c0_i32 = arith.constant 0 : i32
    %c0_i32_0 = arith.constant 0 : i32
    %c0_i32_1 = arith.constant 0 : i32
    return %c0_i32, %c0_i32_0 : i32, i32
  }
  func.func @transform_8(%arg0: i32) -> (i32, i32) {
    %c0_i32 = arith.constant 0 : i32
    %c0_i32_0 = arith.constant 0 : i32
    return %arg0, %c0_i32 : i32, i32
  }
}

</mosaic_0001>

<bundles_post_ra>
// kernel: tpu_custom_call.1
= control target key start
LH: loop header
LB: loop body
LE: loop exit
PB: predicated region body
PF: predicated region fallthrough
CT: control target
= control target key end

     0   :  { %14 = vsyncpa [#allocation4], 0  ;;  %s2468_s0 = inlined_call_operand.<no memory space> [shape: f32[1,1], index: 0, kind: input, shape index: {}]   ;;  %s2469_s1 = inlined_call_operand.hbm [shape: bf16[8,128], index: 1, kind: input, shape index: {}]   ;;  %s2470_s2 = inlined_call_operand.hbm [shape: bf16[128,512], index: 2, kind: input, shape index: {}]   ;;  %s2471_s3 = inlined_call_operand.hbm [shape: f32[1,512], index: 3, kind: input, shape index: {}]   ;;  %s2472_s4 = inlined_call_operand.hbm [shape: bf16[512,384], index: 4, kind: input, shape index: {}]   ;;  %s2473_s5 = inlined_call_operand.vmem [shape: f32[1,384], index: 5, kind: input, shape index: {}]   ;;  %s2474_s6 = inlined_call_operand.hbm [shape: bf16[384,128], index: 6, kind: input, shape index: {}]   ;;  %s2475_s7 = inlined_call_operand.vmem [shape: f32[1,128], index: 7, kind: input, shape index: {}]   ;;  %s2476_s8 = inlined_call_operand.hbm [shape: f32[8,128], index: 8, kind: output, shape index: {}]  }
   0x1   :  { %15 = vsyncpa [#allocation7], 0 }
   0x2   :  { %16 = vsyncpa [#allocation10], 0  ;;  %s35_s29 = sshll.u32 %s2470_s2, 4  ;;  %s36_s29 = int_to_ptr.hbm [resolvable:$true] %s35_s29 }
   0x3   :  { %17 = vsyncpa [#allocation5], 0  ;;  %s2364_s30 = smov [#allocation6]   ;;  %s59_s12 = sshll.u32 %s2472_s4, 4  ;;  %s60_s12 = int_to_ptr.hbm [resolvable:$true] %s59_s12 }
   0x4   :  { %s37_s9 = sshll.u32 %s2364_s30, 4  ;;  %s2365_s13 = smov 256   ;;  %s38_s9 = int_to_ptr.vmem [resolvable:$true] %s37_s9 }
   0x5   :  { %s2366_s14 = smov 16   ;;  %s2367_s15 = smov [#allocation9]  }
   0x6   :  { %43 = dma.hbm_to_vmem [thread:$0]  %s36_s29, 4096, %s38_s9, [#allocation7], %s2365_s13, %s2365_s13, %s2366_s14  }
   0x7   :  { %s61_s16 = sshll.u32 %s2367_s15, 4  ;;  %s2368_s17 = smov 192   ;;  %s62_s16 = int_to_ptr.vmem [resolvable:$true] %s61_s16 }
   0x8   :  { %s2369_s18 = smov 12   ;;  %s25_s20 = sshll.u32 %s2469_s1, 4  ;;  %s26_s20 = int_to_ptr.hbm [resolvable:$true] %s25_s20 }
   0x9   :  { %67 = dma.hbm_to_vmem [thread:$0]  %s60_s12, 12288, %s62_s16, [#allocation10], %s2368_s17, %s2368_s17, %s2369_s18  }
   0xa   :  { %s2370_s21 = smov [#allocation3]   ;;  %s49_s24 = sshll.u32 %s2471_s3, 4  ;;  %s50_s24 = int_to_ptr.hbm [resolvable:$true] %s49_s24 }
   0xb   :  { %s27_s22 = sshll.u32 %s2370_s21, 4  ;;  %s2371_s25 = smov [#allocation8]   ;;  %s28_s22 = int_to_ptr.vmem [resolvable:$true] %s27_s22 }
   0xc   :  { %30 = dma.hbm_to_vmem [thread:$0]  %s26_s20, 64, %s28_s22, [#allocation4]  }
   0xd   :  { %s51_s26 = sshll.u32 %s2371_s25, 4  ;;  %s74_s29 = sshll.u32 %s2474_s6, 4  ;;  %s52_s26 = int_to_ptr.vmem [resolvable:$true] %s51_s26  ;;  %s75_s29 = int_to_ptr.hbm [resolvable:$true] %s74_s29 }
   0xe   :  { %54 = dma.hbm_to_vmem [thread:$0]  %s50_s24, 64, %s52_s26, [#allocation7]  }
   0xf   :  { %s2372_s1 = smov [#allocation11]   ;;  %s2373_s9 = smov 64  }
  0x10   :  { %s76_s30 = sshll.u32 %s2372_s1, 4  ;;  %s2374_s10 = smov 4   ;;  %s77_s30 = int_to_ptr.vmem [resolvable:$true] %s76_s30 }
  0x11   :  { %82 = dma.hbm_to_vmem [thread:$0]  %s75_s29, 3072, %s77_s30, [#allocation10], %s2373_s9, %s2373_s9, %s2374_s10  }
  0x12   :  { %2356 = dma.done.wait [#allocation4], 64  }
  0x13   :  { %2357 = vsyncadd [#allocation4], 4294967232 }
  0x14   :  { %2358 = dma.done.wait [#allocation7], 4160  }
  0x15   :  { %2359 = vsyncadd [#allocation7], 4294963136 }
  0x16   :  { %2360 = dma.done.wait [#allocation10], 15360  }
  0x17   :  { %2361 = vsyncadd [#allocation10], 4294951936  ;;  %v1551_v0 = vld [vmem:[#allocation6 + $0xe0] sm:$0xf]  ;;  %v2075_v1 = vld [vmem:[#allocation6 + $0xec] sm:$0xf0] }
  0x18   :  { %v2073_v2 = vld [vmem:[#allocation6 + $0xe4] sm:$0xf]  ;;  %v1552_v3 = vor.u32 %v2075_v1, %v1551_v0  ;;  %v1553_v4 = vld [vmem:[#allocation6 + $0xf0] sm:$0xf0]  ;;  %v1559_v5 = vld [vmem:[#allocation6 + $0xe8] sm:$0xf] }
  0x19   :  { %v2076_v6 = vld [vmem:[#allocation6 + $0xf4] sm:$0xf0]  ;;  %v1556_v7 = vor.u32 %v2073_v2, %v1553_v4  ;;  %v2074_v9 = vld [vmem:[#allocation6 + $0xec] sm:$0xf]  ;;  %v1561_v10 = vld [vmem:[#allocation6 + $0xf8] sm:$0xf0] }
  0x1a   :  { %v1560_v8 = vor.u32 %v2076_v6, %v1559_v5  ;;  %v1535_v11 = vld [vmem:[#allocation6 + $0xc0] sm:$0xf]  ;;  %309 = vmatpush.bf16.msra.mxu0 %v1552_v3  ;;  %v1564_v12 = vor.u32 %v2074_v9, %v1561_v10  ;;  %v2071_v13 = vld [vmem:[#allocation6 + $0xcc] sm:$0xf0]  ;;  %v2069_v14 = vld [vmem:[#allocation6 + $0xc4] sm:$0xf] }
  0x1b   :  { %v1537_v15 = vld [vmem:[#allocation6 + $0xd0] sm:$0xf0]  ;;  %322 = vmatpush.bf16.msra.mxu1 %v1556_v7  ;;  %v1536_v16 = vor.u32 %v2071_v13, %v1535_v11  ;;  %v1543_v18 = vld [vmem:[#allocation6 + $0xc8] sm:$0xf]  ;;  %v2072_v19 = vld [vmem:[#allocation6 + $0xd4] sm:$0xf0] }
  0x1c   :  { %335 = vmatpush.bf16.msra.mxu2 %v1560_v8  ;;  %v1540_v17 = vor.u32 %v2069_v14, %v1537_v15  ;;  %v2070_v20 = vld [vmem:[#allocation6 + $0xcc] sm:$0xf]  ;;  %348 = vmatpush.bf16.msra.mxu3 %v1564_v12  ;;  %v1544_v21 = vor.u32 %v2072_v19, %v1543_v18  ;;  %v1545_v22 = vld [vmem:[#allocation6 + $0xd8] sm:$0xf0]  ;;  %v1519_v23 = vld [vmem:[#allocation6 + $0xa0] sm:$0xf] }
  0x1d   :  { %v2067_v24 = vld [vmem:[#allocation6 + $0xac] sm:$0xf0]  ;;  %v1548_v25 = vor.u32 %v2070_v20, %v1545_v22  ;;  %v2065_v26 = vld [vmem:[#allocation6 + $0xa4] sm:$0xf]  ;;  %v1521_v27 = vld [vmem:[#allocation6 + $0xb0] sm:$0xf0] }
  0x1e   :  { %v1527_v28 = vld [vmem:[#allocation6 + $0xa8] sm:$0xf]  ;;  %310 = vmatpush.bf16.msra.mxu0 %v1536_v16  ;;  %v1520_v29 = vor.u32 %v2067_v24, %v1519_v23  ;;  %v2068_v30 = vld [vmem:[#allocation6 + $0xb4] sm:$0xf0]  ;;  %v2066_v31 = vld [vmem:[#allocation6 + $0xac] sm:$0xf]  ;;  %v1524_v33 = vor.u32 %v2065_v26, %v1521_v27 }
  0x1f   :  { %v1529_v32 = vld [vmem:[#allocation6 + $0xb8] sm:$0xf0]  ;;  %323 = vmatpush.bf16.msra.mxu1 %v1540_v17  ;;  %v1528_v34 = vor.u32 %v2068_v30, %v1527_v28  ;;  %v1503_v35 = vld [vmem:[#allocation6 + $0x80] sm:$0xf]  ;;  %v2063_v36 = vld [vmem:[#allocation6 + $0x8c] sm:$0xf0] }
  0x20   :  { %336 = vmatpush.bf16.msra.mxu2 %v1544_v21  ;;  %v2061_v37 = vld [vmem:[#allocation6 + $0x84] sm:$0xf]  ;;  %349 = vmatpush.bf16.msra.mxu3 %v1548_v25  ;;  %v1532_v38 = vor.u32 %v2066_v31, %v1529_v32  ;;  %v1505_v39 = vld [vmem:[#allocation6 + $0x90] sm:$0xf0]  ;;  %v1511_v40 = vld [vmem:[#allocation6 + $0x88] sm:$0xf]  ;;  %v1504_v44 = vor.u32 %v2063_v36, %v1503_v35 }
  0x21   :  { %v2064_v41 = vld [vmem:[#allocation6 + $0x94] sm:$0xf0]  ;;  %v2062_v42 = vld [vmem:[#allocation6 + $0x8c] sm:$0xf]  ;;  %v1513_v43 = vld [vmem:[#allocation6 + $0x98] sm:$0xf0]  ;;  %v1508_v45 = vor.u32 %v2061_v37, %v1505_v39 }
  0x22   :  { %311 = vmatpush.bf16.msra.mxu0 %v1520_v29  ;;  %v1512_v46 = vor.u32 %v2064_v41, %v1511_v40  ;;  %v1487_v47 = vld [vmem:[#allocation6 + $0x60] sm:$0xf]  ;;  %v2059_v48 = vld [vmem:[#allocation6 + $0x6c] sm:$0xf0]  ;;  %v2057_v49 = vld [vmem:[#allocation6 + $0x64] sm:$0xf]  ;;  %v1516_v50 = vor.u32 %v2062_v42, %v1513_v43 }
  0x23   :  { %324 = vmatpush.bf16.msra.mxu1 %v1524_v33  ;;  %v1489_v51 = vld [vmem:[#allocation6 + $0x70] sm:$0xf0]  ;;  %v1495_v52 = vld [vmem:[#allocation6 + $0x68] sm:$0xf]  ;;  %v2060_v53 = vld [vmem:[#allocation6 + $0x74] sm:$0xf0]  ;;  %v1488_v56 = vor.u32 %v2059_v48, %v1487_v47 }
  0x24   :  { %337 = vmatpush.bf16.msra.mxu2 %v1528_v34  ;;  %350 = vmatpush.bf16.msra.mxu3 %v1532_v38  ;;  %v2058_v54 = vld [vmem:[#allocation6 + $0x6c] sm:$0xf]  ;;  %v1497_v55 = vld [vmem:[#allocation6 + $0x78] sm:$0xf0]  ;;  %v1492_v57 = vor.u32 %v2057_v49, %v1489_v51  ;;  %v1496_v58 = vor.u32 %v2060_v53, %v1495_v52  ;;  %v1471_v59 = vld [vmem:[#allocation6 + $0x40] sm:$0xf] }
  0x25   :  { %v2055_v60 = vld [vmem:[#allocation6 + $0x4c] sm:$0xf0]  ;;  %v2053_v61 = vld [vmem:[#allocation6 + $0x44] sm:$0xf]  ;;  %v1500_v62 = vor.u32 %v2058_v54, %v1497_v55  ;;  %v1473_v63 = vld [vmem:[#allocation6 + $0x50] sm:$0xf0] }
  0x26   :  { %312 = vmatpush.bf16.msra.mxu0 %v1504_v44  ;;  %v1479_v0 = vld [vmem:[#allocation6 + $0x48] sm:$0xf]  ;;  %v2056_v1 = vld [vmem:[#allocation6 + $0x54] sm:$0xf0]  ;;  %v2054_v2 = vld [vmem:[#allocation6 + $0x4c] sm:$0xf]  ;;  %v1472_v4 = vor.u32 %v2055_v60, %v1471_v59  ;;  %v1476_v5 = vor.u32 %v2053_v61, %v1473_v63 }
  0x27   :  { %325 = vmatpush.bf16.msra.mxu1 %v1508_v45  ;;  %v1481_v3 = vld [vmem:[#allocation6 + $0x58] sm:$0xf0]  ;;  %v1480_v6 = vor.u32 %v2056_v1, %v1479_v0  ;;  %v1455_v7 = vld [vmem:[#allocation6 + $0x20] sm:$0xf]  ;;  %v2051_v8 = vld [vmem:[#allocation6 + $0x2c] sm:$0xf0] }
  0x28   :  { %338 = vmatpush.bf16.msra.mxu2 %v1512_v46  ;;  %351 = vmatpush.bf16.msra.mxu3 %v1516_v50  ;;  %v2049_v9 = vld [vmem:[#allocation6 + $0x24] sm:$0xf]  ;;  %v1484_v10 = vor.u32 %v2054_v2, %v1481_v3  ;;  %v1457_v11 = vld [vmem:[#allocation6 + $0x30] sm:$0xf0]  ;;  %v1463_v12 = vld [vmem:[#allocation6 + $0x28] sm:$0xf]  ;;  %v1456_v16 = vor.u32 %v2051_v8, %v1455_v7 }
  0x29   :  { %v2052_v13 = vld [vmem:[#allocation6 + $0x34] sm:$0xf0]  ;;  %v2050_v14 = vld [vmem:[#allocation6 + $0x2c] sm:$0xf]  ;;  %v1465_v15 = vld [vmem:[#allocation6 + $0x38] sm:$0xf0]  ;;  %v1460_v18 = vor.u32 %v2049_v9, %v1457_v11 }
  0x2a   :  { %313 = vmatpush.bf16.msra.mxu0 %v1488_v56  ;;  %v1439_v17 = vld [vmem:[#allocation6] sm:$0xf]  ;;  %v1464_v19 = vor.u32 %v2052_v13, %v1463_v12  ;;  %v2047_v20 = vld [vmem:[#allocation6 + $0xc] sm:$0xf0]  ;;  %v2045_v21 = vld [vmem:[#allocation6 + $0x4] sm:$0xf]  ;;  %v1468_v23 = vor.u32 %v2050_v14, %v1465_v15 }
  0x2b   :  { %326 = vmatpush.bf16.msra.mxu1 %v1492_v57  ;;  %v1441_v22 = vld [vmem:[#allocation6 + $0x10] sm:$0xf0]  ;;  %v1447_v24 = vld [vmem:[#allocation6 + $0x8] sm:$0xf]  ;;  %v2048_v25 = vld [vmem:[#allocation6 + $0x14] sm:$0xf0]  ;;  %v1440_v30 = vor.u32 %v2047_v20, %v1439_v17 }
  0x2c   :  { %339 = vmatpush.bf16.msra.mxu2 %v1496_v58  ;;  %352 = vmatpush.bf16.msra.mxu3 %v1500_v62  ;;  %v2046_v26 = vld [vmem:[#allocation6 + $0xc] sm:$0xf]  ;;  %v1449_v27 = vld [vmem:[#allocation6 + $0x18] sm:$0xf0]  ;;  %v2099_v29 = vld [vmem:[#allocation9 + $0xb0] sm:$0xf0]  ;;  %v1444_v33 = vor.u32 %v2045_v21, %v1441_v22  ;;  %v1448_v34 = vor.u32 %v2048_v25, %v1447_v24 }
  0x2d   :  { %v1651_v28 = vld [vmem:[#allocation9 + $0xa8] sm:$0xf]  ;;  %v2123_v32 = vld [vmem:[#allocation9 + $0x170] sm:$0xf0]  ;;  %v1452_v35 = vor.u32 %v2046_v26, %v1449_v27  ;;  %v1639_v37 = vld [vmem:[#allocation9 + $0x90] sm:$0xf] }
  0x2e   :  { %314 = vmatpush.bf16.msra.mxu0 %v1472_v4  ;;  %v1747_v31 = vld [vmem:[#allocation9 + $0x168] sm:$0xf]  ;;  %v1652_v36 = vor.u32 %v2099_v29, %v1651_v28  ;;  %v2147_v39 = vld [vmem:[#allocation9 + $0x230] sm:$0xf0]  ;;  %v2096_v41 = vld [vmem:[#allocation9 + $0x98] sm:$0xf0] }
  0x2f   :  { %327 = vmatpush.bf16.msra.mxu1 %v1476_v5  ;;  %v1843_v38 = vld [vmem:[#allocation9 + $0x228] sm:$0xf]  ;;  %v1748_v40 = vor.u32 %v2123_v32, %v1747_v31  ;;  %v2171_v43 = vld [vmem:[#allocation9 + $0x2f0] sm:$0xf0]  ;;  %v106_v44 = vld [vmem:[#allocation3] sm:$0xf]  ;;  %v1640_v48 = vor.u32 %v2096_v41, %v1639_v37 }
  0x30   :  { %340 = vmatpush.bf16.msra.mxu2 %v1480_v6  ;;  %353 = vmatpush.bf16.msra.mxu3 %v1484_v10  ;;  %v1939_v42 = vld [vmem:[#allocation9 + $0x2e8] sm:$0xf]  ;;  %v1735_v45 = vld [vmem:[#allocation9 + $0x150] sm:$0xf]  ;;  %v2120_v46 = vld [vmem:[#allocation9 + $0x158] sm:$0xf0]  ;;  %v1844_v47 = vor.u32 %v2147_v39, %v1843_v38 }
  0x31   :  { %v1940_v49 = vor.u32 %v2171_v43, %v1939_v42  ;;  %v1627_v50 = vld [vmem:[#allocation9 + $0x78] sm:$0xf]  ;;  %v1831_v51 = vld [vmem:[#allocation9 + $0x210] sm:$0xf]  ;;  %v2144_v52 = vld [vmem:[#allocation9 + $0x218] sm:$0xf0]  ;;  %v1736_v53 = vor.u32 %v2120_v46, %v1735_v45 }
  0x32   :  { %315 = vmatpush.bf16.msra.mxu0 %v1456_v16  ;;  %v2093_v54 = vld [vmem:[#allocation9 + $0x80] sm:$0xf0]  ;;  %v1927_v55 = vld [vmem:[#allocation9 + $0x2d0] sm:$0xf]  ;;  %v2168_v56 = vld [vmem:[#allocation9 + $0x2d8] sm:$0xf0]  ;;  %v1832_v59 = vor.u32 %v2144_v52, %v1831_v51 }
  0x33   :  { %328 = vmatpush.bf16.msra.mxu1 %v1460_v18  ;;  %v1723_v57 = vld [vmem:[#allocation9 + $0x138] sm:$0xf]  ;;  %v2117_v58 = vld [vmem:[#allocation9 + $0x140] sm:$0xf0]  ;;  %v1628_v60 = vor.u32 %v2093_v54, %v1627_v50  ;;  %v1928_v61 = vor.u32 %v2168_v56, %v1927_v55  ;;  %v1615_v62 = vld [vmem:[#allocation9 + $0x60] sm:$0xf] }
  0x34   :  { %341 = vmatpush.bf16.msra.mxu2 %v1464_v19  ;;  %354 = vmatpush.bf16.msra.mxu3 %v1468_v23  ;;  %v1819_v63 = vld [vmem:[#allocation9 + $0x1f8] sm:$0xf]  ;;  %v2141_v0 = vld [vmem:[#allocation9 + $0x200] sm:$0xf0]  ;;  %v1724_v1 = vor.u32 %v2117_v58, %v1723_v57  ;;  %v2090_v2 = vld [vmem:[#allocation9 + $0x68] sm:$0xf0] }
  0x35   :  { %v1915_v3 = vld [vmem:[#allocation9 + $0x2b8] sm:$0xf]  ;;  %v2165_v4 = vld [vmem:[#allocation9 + $0x2c0] sm:$0xf0]  ;;  %v1711_v5 = vld [vmem:[#allocation9 + $0x120] sm:$0xf]  ;;  %v1820_v7 = vor.u32 %v2141_v0, %v1819_v63  ;;  %v1616_v8 = vor.u32 %v2090_v2, %v1615_v62 }
  0x36   :  { %316 = vmatpush.bf16.msra.mxu0 %v1440_v30  ;;  %v2114_v6 = vld [vmem:[#allocation9 + $0x128] sm:$0xf0]  ;;  %v1916_v9 = vor.u32 %v2165_v4, %v1915_v3  ;;  %v1603_v10 = vld [vmem:[#allocation9 + $0x48] sm:$0xf]  ;;  %v1807_v11 = vld [vmem:[#allocation9 + $0x1e0] sm:$0xf] }
  0x37   :  { %329 = vmatpush.bf16.msra.mxu1 %v1444_v33  ;;  %v2138_v12 = vld [vmem:[#allocation9 + $0x1e8] sm:$0xf0]  ;;  %v1712_v13 = vor.u32 %v2114_v6, %v1711_v5  ;;  %v2087_v14 = vld [vmem:[#allocation9 + $0x50] sm:$0xf0]  ;;  %v1903_v15 = vld [vmem:[#allocation9 + $0x2a0] sm:$0xf] }
  0x38   :  { %342 = vmatpush.bf16.msra.mxu2 %v1448_v34  ;;  %355 = vmatpush.bf16.msra.mxu3 %v1452_v35  ;;  %v2162_v16 = vld [vmem:[#allocation9 + $0x2a8] sm:$0xf0]  ;;  %v1699_v17 = vld [vmem:[#allocation9 + $0x108] sm:$0xf]  ;;  %v2111_v18 = vld [vmem:[#allocation9 + $0x110] sm:$0xf0]  ;;  %v1808_v19 = vor.u32 %v2138_v12, %v1807_v11  ;;  %v1604_v20 = vor.u32 %v2087_v14, %v1603_v10 }
  0x39   :  { %317 = vmatmul.bf16.vlgmr.msra.gmra.mxu0 %v106_v44  ;;  %v1904_v21 = vor.u32 %v2162_v16, %v1903_v15  ;;  %v1591_v22 = vld [vmem:[#allocation9 + $0x30] sm:$0xf]  ;;  %v1795_v23 = vld [vmem:[#allocation9 + $0x1c8] sm:$0xf]  ;;  %v2135_v24 = vld [vmem:[#allocation9 + $0x1d0] sm:$0xf0]  ;;  %v1700_v25 = vor.u32 %v2111_v18, %v1699_v17 }
  0x3a   :  { %1017 = vmatpush.bf16.msrb.mxu0 %v1652_v36  ;;  %330 = vmatmul.bf16.vlgmr.msra.gmra.mxu1 %v106_v44  ;;  %v2084_v26 = vld [vmem:[#allocation9 + $0x38] sm:$0xf0]  ;;  %v1891_v27 = vld [vmem:[#allocation9 + $0x288] sm:$0xf]  ;;  %v2159_v28 = vld [vmem:[#allocation9 + $0x290] sm:$0xf0]  ;;  %v1796_v31 = vor.u32 %v2135_v24, %v1795_v23 }
  0x3b   :  { %1030 = vmatpush.bf16.msrb.mxu1 %v1748_v40  ;;  %343 = vmatmul.bf16.vlgmr.msra.gmra.mxu2 %v106_v44  ;;  %v1687_v29 = vld [vmem:[#allocation9 + $0xf0] sm:$0xf]  ;;  %v2108_v30 = vld [vmem:[#allocation9 + $0xf8] sm:$0xf0]  ;;  %v1592_v32 = vor.u32 %v2084_v26, %v1591_v22  ;;  %v1892_v33 = vor.u32 %v2159_v28, %v1891_v27  ;;  %v1579_v34 = vld [vmem:[#allocation9 + $0x18] sm:$0xf] }
  0x3c   :  { %356 = vmatmul.bf16.vlgmr.msra.gmra.mxu3 %v106_v44  ;;  %1043 = vmatpush.bf16.msrb.mxu2 %v1844_v47  ;;  %v1783_v35 = vld [vmem:[#allocation9 + $0x1b0] sm:$0xf]  ;;  %v2132_v36 = vld [vmem:[#allocation9 + $0x1b8] sm:$0xf0]  ;;  %v1688_v37 = vor.u32 %v2108_v30, %v1687_v29  ;;  %v2081_v38 = vld [vmem:[#allocation9 + $0x20] sm:$0xf0] }
  0x3d   :  { %1056 = vmatpush.bf16.msrb.mxu3 %v1940_v49  ;;  %v1879_v39 = vld [vmem:[#allocation9 + $0x270] sm:$0xf]  ;;  %v2156_v40 = vld [vmem:[#allocation9 + $0x278] sm:$0xf0]  ;;  %v1675_v41 = vld [vmem:[#allocation9 + $0xd8] sm:$0xf]  ;;  %v1784_v43 = vor.u32 %v2132_v36, %v1783_v35  ;;  %v1580_v45 = vor.u32 %v2081_v38, %v1579_v34 }
  0x3e   :  { %1018 = vmatpush.bf16.msrb.mxu0 %v1640_v48  ;;  %v2105_v42 = vld [vmem:[#allocation9 + $0xe0] sm:$0xf0]  ;;  %v1567_v44 = vld [vmem:[#allocation9] sm:$0xf]  ;;  %v1880_v46 = vor.u32 %v2156_v40, %v1879_v39  ;;  %v2078_v47 = vld [vmem:[#allocation9 + $0x8] sm:$0xf0] }
  0x3f   :  { %1031 = vmatpush.bf16.msrb.mxu1 %v1736_v53  ;;  %v1771_v48 = vld [vmem:[#allocation9 + $0x198] sm:$0xf]  ;;  %v2129_v49 = vld [vmem:[#allocation9 + $0x1a0] sm:$0xf0]  ;;  %v1676_v50 = vor.u32 %v2105_v42, %v1675_v41  ;;  %v1663_v51 = vld [vmem:[#allocation9 + $0xc0] sm:$0xf] }
  0x40   :  { %1044 = vmatpush.bf16.msrb.mxu2 %v1832_v59  ;;  %v1867_v52 = vld [vmem:[#allocation9 + $0x258] sm:$0xf]  ;;  %v2153_v53 = vld [vmem:[#allocation9 + $0x260] sm:$0xf0]  ;;  %v2102_v54 = vld [vmem:[#allocation9 + $0xc8] sm:$0xf0]  ;;  %v1772_v59 = vor.u32 %v2129_v49, %v1771_v48 }
  0x41   :  { %1057 = vmatpush.bf16.msrb.mxu3 %v1928_v61  ;;  %v2098_v55 = vld [vmem:[#allocation9 + $0xac] sm:$0xf]  ;;  %v1653_v56 = vld [vmem:[#allocation9 + $0xb4] sm:$0xf0]  ;;  %v1868_v61 = vor.u32 %v2153_v53, %v1867_v52  ;;  %v2095_v62 = vld [vmem:[#allocation9 + $0x94] sm:$0xf]  ;;  %v1664_v2 = vor.u32 %v2102_v54, %v1663_v51 }
  0x42   :  { %1019 = vmatpush.bf16.msrb.mxu0 %v1628_v60  ;;  %v2122_v57 = vld [vmem:[#allocation9 + $0x16c] sm:$0xf]  ;;  %v1749_v58 = vld [vmem:[#allocation9 + $0x174] sm:$0xf0]  ;;  %v1568_v60 = vor.u32 %v2078_v47, %v1567_v44  ;;  %v1759_v63 = vld [vmem:[#allocation9 + $0x180] sm:$0xf]  ;;  %v1656_v3 = vor.u32 %v2098_v55, %v1653_v56 }
  0x43   :  { %1032 = vmatpush.bf16.msrb.mxu1 %v1724_v1  ;;  %v2126_v0 = vld [vmem:[#allocation9 + $0x188] sm:$0xf0]  ;;  %v1855_v1 = vld [vmem:[#allocation9 + $0x240] sm:$0xf]  ;;  %v1845_v6 = vld [vmem:[#allocation9 + $0x234] sm:$0xf0] }
  0x44   :  { %1045 = vmatpush.bf16.msrb.mxu2 %v1820_v7  ;;  %v2150_v4 = vld [vmem:[#allocation9 + $0x248] sm:$0xf0]  ;;  %v1752_v7 = vor.u32 %v2122_v57, %v1749_v58  ;;  %v1941_v10 = vld [vmem:[#allocation9 + $0x2f4] sm:$0xf0]  ;;  %v2119_v11 = vld [vmem:[#allocation9 + $0x154] sm:$0xf] }
  0x45   :  { %1058 = vmatpush.bf16.msrb.mxu3 %v1916_v9  ;;  %v2146_v5 = vld [vmem:[#allocation9 + $0x22c] sm:$0xf]  ;;  %v1737_v12 = vld [vmem:[#allocation9 + $0x15c] sm:$0xf0]  ;;  %v1856_v14 = vor.u32 %v2150_v4, %v1855_v1  ;;  %v2092_v18 = vld [vmem:[#allocation9 + $0x7c] sm:$0xf] }
  0x46   :  { %1020 = vmatpush.bf16.msrb.mxu0 %v1616_v8  ;;  %v1641_v8 = vld [vmem:[#allocation9 + $0x9c] sm:$0xf0]  ;;  %v2170_v9 = vld [vmem:[#allocation9 + $0x2ec] sm:$0xf]  ;;  %v1848_v15 = vor.u32 %v2146_v5, %v1845_v6  ;;  %v1629_v22 = vld [vmem:[#allocation9 + $0x84] sm:$0xf0] }
  0x47   :  { %1033 = vmatpush.bf16.msrb.mxu1 %v1712_v13  ;;  %v1760_v13 = vor.u32 %v2126_v0, %v1759_v63  ;;  %v1644_v16 = vor.u32 %v2095_v62, %v1641_v8  ;;  %v1944_v17 = vor.u32 %v2170_v9, %v1941_v10  ;;  %v2167_v23 = vld [vmem:[#allocation9 + $0x2d4] sm:$0xf]  ;;  %v1929_v24 = vld [vmem:[#allocation9 + $0x2dc] sm:$0xf0]  ;;  %v1725_v26 = vld [vmem:[#allocation9 + $0x144] sm:$0xf0]  ;;  %v1632_v28 = vor.u32 %v2092_v18, %v1629_v22 }
  0x48   :  { %1046 = vmatpush.bf16.msrb.mxu2 %v1808_v19  ;;  %v2143_v19 = vld [vmem:[#allocation9 + $0x214] sm:$0xf]  ;;  %v1932_v29 = vor.u32 %v2167_v23, %v1929_v24  ;;  %v2089_v30 = vld [vmem:[#allocation9 + $0x64] sm:$0xf]  ;;  %v1617_v34 = vld [vmem:[#allocation9 + $0x6c] sm:$0xf0] }
  0x49   :  { %1059 = vmatpush.bf16.msrb.mxu3 %v1904_v21  ;;  %v1740_v21 = vor.u32 %v2119_v11, %v1737_v12  ;;  %v2164_v35 = vld [vmem:[#allocation9 + $0x2bc] sm:$0xf]  ;;  %v1917_v36 = vld [vmem:[#allocation9 + $0x2c4] sm:$0xf0]  ;;  %v1713_v38 = vld [vmem:[#allocation9 + $0x12c] sm:$0xf0]  ;;  %v1620_v40 = vor.u32 %v2089_v30, %v1617_v34 }
  0x4a   :  { %1021 = vmatpush.bf16.msrb.mxu0 %v1604_v20  ;;  %v1833_v20 = vld [vmem:[#allocation9 + $0x21c] sm:$0xf0]  ;;  %v1920_v41 = vor.u32 %v2164_v35, %v1917_v36  ;;  %v2086_v42 = vld [vmem:[#allocation9 + $0x4c] sm:$0xf]  ;;  %v1809_v44 = vld [vmem:[#allocation9 + $0x1ec] sm:$0xf0] }
  0x4b   :  { %1034 = vmatpush.bf16.msrb.mxu1 %v1700_v25  ;;  %v2116_v25 = vld [vmem:[#allocation9 + $0x13c] sm:$0xf]  ;;  %v1836_v27 = vor.u32 %v2143_v19, %v1833_v20  ;;  %v2161_v47 = vld [vmem:[#allocation9 + $0x2a4] sm:$0xf]  ;;  %v1905_v48 = vld [vmem:[#allocation9 + $0x2ac] sm:$0xf0] }
  0x4c   :  { %1047 = vmatpush.bf16.msrb.mxu2 %v1796_v31  ;;  %v2140_v31 = vld [vmem:[#allocation9 + $0x1fc] sm:$0xf]  ;;  %v2110_v49 = vld [vmem:[#allocation9 + $0x10c] sm:$0xf]  ;;  %v1908_v53 = vor.u32 %v2161_v47, %v1905_v48  ;;  %v2083_v55 = vld [vmem:[#allocation9 + $0x34] sm:$0xf] }
  0x4d   :  { %1060 = vmatpush.bf16.msrb.mxu3 %v1892_v33  ;;  %v1728_v33 = vor.u32 %v2116_v25, %v1725_v26  ;;  %v1593_v56 = vld [vmem:[#allocation9 + $0x3c] sm:$0xf0]  ;;  %v2107_v57 = vld [vmem:[#allocation9 + $0xf4] sm:$0xf]  ;;  %v1797_v62 = vld [vmem:[#allocation9 + $0x1d4] sm:$0xf0] }
  0x4e   :  { %1022 = vmatpush.bf16.msrb.mxu0 %v1592_v32  ;;  %v1821_v32 = vld [vmem:[#allocation9 + $0x204] sm:$0xf0]  ;;  %v1689_v58 = vld [vmem:[#allocation9 + $0xfc] sm:$0xf0]  ;;  %v2158_v63 = vld [vmem:[#allocation9 + $0x28c] sm:$0xf] }
  0x4f   :  { %1035 = vmatpush.bf16.msrb.mxu1 %v1688_v37  ;;  %v2113_v37 = vld [vmem:[#allocation9 + $0x124] sm:$0xf]  ;;  %v1824_v39 = vor.u32 %v2140_v31, %v1821_v32  ;;  %v1893_v1 = vld [vmem:[#allocation9 + $0x294] sm:$0xf0]  ;;  %v1581_v4 = vld [vmem:[#allocation9 + $0x24] sm:$0xf0] }
  0x50   :  { %1048 = vmatpush.bf16.msrb.mxu2 %v1784_v43  ;;  %v2137_v43 = vld [vmem:[#allocation9 + $0x1e4] sm:$0xf]  ;;  %v2104_v5 = vld [vmem:[#allocation9 + $0xdc] sm:$0xf]  ;;  %v2131_v9 = vld [vmem:[#allocation9 + $0x1b4] sm:$0xf] }
  0x51   :  { %1061 = vmatpush.bf16.msrb.mxu3 %v1880_v46  ;;  %v1605_v46 = vld [vmem:[#allocation9 + $0x54] sm:$0xf0]  ;;  %v1812_v51 = vor.u32 %v2137_v43, %v1809_v44  ;;  %v1785_v10 = vld [vmem:[#allocation9 + $0x1bc] sm:$0xf0]  ;;  %v2155_v11 = vld [vmem:[#allocation9 + $0x274] sm:$0xf] }
  0x52   :  { %1023 = vmatpush.bf16.msrb.mxu0 %v1580_v45  ;;  %v1716_v45 = vor.u32 %v2113_v37, %v1713_v38  ;;  %v1608_v52 = vor.u32 %v2086_v42, %v1605_v46  ;;  %v1788_v12 = vor.u32 %v2131_v9, %v1785_v10  ;;  %v2101_v18 = vld [vmem:[#allocation9 + $0xc4] sm:$0xf]  ;;  %v1665_v19 = vld [vmem:[#allocation9 + $0xcc] sm:$0xf0]  ;;  %v1773_v22 = vld [vmem:[#allocation9 + $0x1a4] sm:$0xf0] }
  0x53   :  { %1036 = vmatpush.bf16.msrb.mxu1 %v1676_v50  ;;  %v1701_v50 = vld [vmem:[#allocation9 + $0x114] sm:$0xf0]  ;;  %v1668_v20 = vor.u32 %v2101_v18, %v1665_v19  ;;  %v2152_v24 = vld [vmem:[#allocation9 + $0x25c] sm:$0xf]  ;;  %v1869_v25 = vld [vmem:[#allocation9 + $0x264] sm:$0xf0] }
  0x54   :  { %1049 = vmatpush.bf16.msrb.mxu2 %v1772_v59  ;;  %v1704_v54 = vor.u32 %v2110_v49, %v1701_v50  ;;  %v1596_v59 = vor.u32 %v2083_v55, %v1593_v56  ;;  %v1872_v26 = vor.u32 %v2152_v24, %v1869_v25  ;;  %v2149_v30 = vld [vmem:[#allocation9 + $0x244] sm:$0xf]  ;;  %v1857_v31 = vld [vmem:[#allocation9 + $0x24c] sm:$0xf0]  ;;  %v2124_v43 = vld [vmem:[#allocation9 + $0x178] sm:$0xf0] }
  0x55   :  { %1062 = vmatpush.bf16.msrb.mxu3 %v1868_v61  ;;  %v2134_v61 = vld [vmem:[#allocation9 + $0x1cc] sm:$0xf]  ;;  %v1860_v32 = vor.u32 %v2149_v30, %v1857_v31  ;;  %v1755_v42 = vld [vmem:[#allocation9 + $0x170] sm:$0xf]  ;;  %v2121_v55 = vld [vmem:[#allocation9 + $0x160] sm:$0xf0] }
  0x56   :  { %1024 = vmatpush.bf16.msrb.mxu0 %v1568_v60  ;;  %v1692_v60 = vor.u32 %v2107_v57, %v1689_v58  ;;  %v1800_v0 = vor.u32 %v2134_v61, %v1797_v62  ;;  %v1756_v50 = vor.u32 %v2124_v43, %v1755_v42  ;;  %v1851_v61 = vld [vmem:[#allocation9 + $0x230] sm:$0xf]  ;;  %v2148_v62 = vld [vmem:[#allocation9 + $0x238] sm:$0xf0]  ;;  %v2169_v19 = vld [vmem:[#allocation9 + $0x2e0] sm:$0xf0] }
  0x57   :  { %1037 = vmatpush.bf16.msrb.mxu1 %v1664_v2  ;;  %v1896_v2 = vor.u32 %v2158_v63, %v1893_v1  ;;  %v1947_v63 = vld [vmem:[#allocation9 + $0x2f0] sm:$0xf]  ;;  %v1852_v10 = vor.u32 %v2148_v62, %v1851_v61  ;;  %v2142_v30 = vld [vmem:[#allocation9 + $0x208] sm:$0xf0]  ;;  %v1683_v62 = vld [vmem:[#allocation9 + $0xe0] sm:$0xf] }
  0x58   :  { %1050 = vmatpush.bf16.msrb.mxu2 %v1760_v13  ;;  %v1881_v13 = vld [vmem:[#allocation9 + $0x27c] sm:$0xf0]  ;;  %v2082_v61 = vld [vmem:[#allocation9 + $0x28] sm:$0xf0]  ;;  %s2375_s14 = smov [#allocation12]   ;;  %s1425_s18 = sshll.u32 %s2476_s8, 4  ;;  %s1426_s18 = int_to_ptr.hbm [resolvable:$true] %s1425_s18 }
  0x59   :  { %1063 = vmatpush.bf16.msrb.mxu3 %v1856_v14  ;;  %v1884_v14 = vor.u32 %v2155_v11, %v1881_v13  ;;  %s1423_s15 = sshll.u32 %s2375_s14, 4  ;;  %s1424_s15 = int_to_ptr.vmem [resolvable:$true] %s1423_s15 }
  0x5a   :  { %1069 = vmatpush.bf16.msra.mxu0 %v1656_v3  ;;  %v2080_v3 = vld [vmem:[#allocation9 + $0x1c] sm:$0xf] }
  0x5b   :  { %1082 = vmatpush.bf16.msra.mxu1 %v1752_v7  ;;  %v1584_v6 = vor.u32 %v2080_v3, %v1581_v4  ;;  %v1677_v7 = vld [vmem:[#allocation9 + $0xe4] sm:$0xf0]  ;;  %v2172_v3 = vld [vmem:[#allocation9 + $0x2f8] sm:$0xf0]  ;;  %v1635_v4 = vld [vmem:[#allocation9 + $0x80] sm:$0xf] }
  0x5c   :  { %1095 = vmatpush.bf16.msra.mxu2 %v1848_v15  ;;  %v1680_v8 = vor.u32 %v2104_v5, %v1677_v7  ;;  %v2077_v15 = vld [vmem:[#allocation9 + $0x4] sm:$0xf]  ;;  %v2094_v5 = vld [vmem:[#allocation9 + $0x88] sm:$0xf0]  ;;  %v1731_v7 = vld [vmem:[#allocation9 + $0x140] sm:$0xf] }
  0x5d   :  { %1108 = vmatpush.bf16.msra.mxu3 %v1944_v17  ;;  %v1636_v13 = vor.u32 %v2094_v5, %v1635_v4 }
  0x5e   :  { %1070 = vmatpush.bf16.msra.mxu0 %v1644_v16  ;;  %v1569_v16 = vld [vmem:[#allocation9 + $0xc] sm:$0xf0] }
  0x5f   :  { %1083 = vmatpush.bf16.msra.mxu1 %v1740_v21  ;;  %v1572_v17 = vor.u32 %v2077_v15, %v1569_v16  ;;  %v2128_v21 = vld [vmem:[#allocation9 + $0x19c] sm:$0xf]  ;;  %v2145_v15 = vld [vmem:[#allocation9 + $0x220] sm:$0xf0]  ;;  %v1935_v16 = vld [vmem:[#allocation9 + $0x2d8] sm:$0xf] }
  0x60   :  { %1096 = vmatpush.bf16.msra.mxu2 %v1836_v27  ;;  %v1776_v23 = vor.u32 %v2128_v21, %v1773_v22  ;;  %v2125_v27 = vld [vmem:[#allocation9 + $0x184] sm:$0xf]  ;;  %v2091_v21 = vld [vmem:[#allocation9 + $0x70] sm:$0xf0]  ;;  %v1719_v22 = vld [vmem:[#allocation9 + $0x128] sm:$0xf] }
  0x61   :  { %1109 = vmatpush.bf16.msra.mxu3 %v1932_v29 }
  0x62   :  { %1071 = vmatpush.bf16.msra.mxu0 %v1632_v28  ;;  %v1761_v28 = vld [vmem:[#allocation9 + $0x18c] sm:$0xf0] }
  0x63   :  { %1084 = vmatpush.bf16.msra.mxu1 %v1728_v33  ;;  %v1764_v29 = vor.u32 %v2125_v27, %v1761_v28  ;;  %v139_v33 = vld [vmem:[#allocation8] sm:$0xf]  ;;  %v1936_v27 = vor.u32 %v2169_v19, %v1935_v16  ;;  %v2130_v16 = vld [vmem:[#allocation9 + $0x1a8] sm:$0xf0] }
  0x64   :  { %1097 = vmatpush.bf16.msra.mxu2 %v1824_v39  ;;  %v141_v34 = vperm.slane %v139_v33, 0  ;;  %v142_v35 = vperm.slane %v139_v33, 1  ;;  %v1659_v39 = vld [vmem:[#allocation9 + $0xb0] sm:$0xf]  ;;  %v143_v46 = vperm.slane %v139_v33, 2  ;;  %v144_v49 = vperm.slane %v139_v33, 3 }
  0x65   :  { %1110 = vmatpush.bf16.msra.mxu3 %v1920_v41  ;;  %v2166_v33 = vld [vmem:[#allocation9 + $0x2c8] sm:$0xf0] }
  0x66   :  { %1072 = vmatpush.bf16.msra.mxu0 %v1620_v40  ;;  %v2100_v40 = vld [vmem:[#allocation9 + $0xb8] sm:$0xf0] }
  0x67   :  { %1085 = vmatpush.bf16.msra.mxu1 %v1716_v45  ;;  %v1660_v47 = vor.u32 %v2100_v40, %v1659_v39  ;;  %v1815_v40 = vld [vmem:[#allocation9 + $0x1e8] sm:$0xf] }
  0x68   :  { %1098 = vmatpush.bf16.msra.mxu2 %v1812_v51  ;;  %v1647_v51 = vld [vmem:[#allocation9 + $0x98] sm:$0xf] }
  0x69   :  { %1111 = vmatpush.bf16.msra.mxu3 %v1908_v53 }
  0x6a   :  { %1073 = vmatpush.bf16.msra.mxu0 %v1608_v52  ;;  %v2097_v52 = vld [vmem:[#allocation9 + $0xa0] sm:$0xf0] }
  0x6b   :  { %1086 = vmatpush.bf16.msra.mxu1 %v1704_v54  ;;  %v1743_v54 = vld [vmem:[#allocation9 + $0x158] sm:$0xf] }
  0x6c   :  { %1099 = vmatpush.bf16.msra.mxu2 %v1800_v0 }
  0x6d   :  { %1112 = vmatpush.bf16.msra.mxu3 %v1896_v2  ;;  %v1744_v2 = vor.u32 %v2121_v55, %v1743_v54  ;;  %v1803_v54 = vld [vmem:[#allocation9 + $0x1d0] sm:$0xf]  ;;  %v2136_v55 = vld [vmem:[#allocation9 + $0x1d8] sm:$0xf0] }
  0x6e   :  { %1074 = vmatpush.bf16.msra.mxu0 %v1596_v59 }
  0x6f   :  { %1087 = vmatpush.bf16.msra.mxu1 %v1692_v60  ;;  %v1648_v60 = vor.u32 %v2097_v52, %v1647_v51 }
  0x70   :  { %1100 = vmatpush.bf16.msra.mxu2 %v1788_v12  ;;  %v1948_v12 = vor.u32 %v2172_v3, %v1947_v63  ;;  %v2106_v63 = vld [vmem:[#allocation9 + $0xe8] sm:$0xf0]  ;;  %v2133_v3 = vld [vmem:[#allocation9 + $0x1c0] sm:$0xf0] }
  0x71   :  { %1113 = vmatpush.bf16.msra.mxu3 %v1884_v14  ;;  %v1839_v14 = vld [vmem:[#allocation9 + $0x218] sm:$0xf]  ;;  %v1684_v5 = vor.u32 %v2106_v63, %v1683_v62 }
  0x72   :  { %1075 = vmatpush.bf16.msra.mxu0 %v1584_v6  ;;  %v1840_v25 = vor.u32 %v2145_v15, %v1839_v14  ;;  %v1779_v15 = vld [vmem:[#allocation9 + $0x1a0] sm:$0xf] }
  0x73   :  { %1088 = vmatpush.bf16.msra.mxu1 %v1680_v8  ;;  %v2118_v8 = vld [vmem:[#allocation9 + $0x148] sm:$0xf0] }
  0x74   :  { %1101 = vmatpush.bf16.msra.mxu2 %v1776_v23  ;;  %v1732_v18 = vor.u32 %v2118_v8, %v1731_v7  ;;  %v2115_v23 = vld [vmem:[#allocation9 + $0x130] sm:$0xf0]  ;;  %v2157_v7 = vld [vmem:[#allocation9 + $0x280] sm:$0xf0]  ;;  %v1575_v8 = vld [vmem:[#allocation9 + $0x8] sm:$0xf] }
  0x75   :  { %1114 = vmatpush.bf16.msra.mxu3 %v1872_v26  ;;  %v1720_v31 = vor.u32 %v2115_v23, %v1719_v22  ;;  %v2180_v22 = vld [vmem:[#allocation11 + $0x38] sm:$0xff]  ;;  %v1780_v23 = vor.u32 %v2130_v16, %v1779_v15 }
  0x76   :  { %1076 = vmatpush.bf16.msra.mxu0 %v1572_v17 }
  0x77   :  { %1089 = vmatpush.bf16.msra.mxu1 %v1668_v20  ;;  %v1623_v20 = vld [vmem:[#allocation9 + $0x68] sm:$0xf] }
  0x78   :  { %1102 = vmatpush.bf16.msra.mxu2 %v1764_v29  ;;  %v1624_v28 = vor.u32 %v2091_v21, %v1623_v20  ;;  %v1827_v29 = vld [vmem:[#allocation9 + $0x200] sm:$0xf]  ;;  %v2154_v21 = vld [vmem:[#allocation9 + $0x268] sm:$0xf0] }
  0x79   :  { %1115 = vmatpush.bf16.msra.mxu3 %v1860_v32  ;;  %v1923_v32 = vld [vmem:[#allocation9 + $0x2c0] sm:$0xf] }
  0x7a   :  { %v1924_v39 = vor.u32 %v2166_v33, %v1923_v32  ;;  %v1875_v20 = vld [vmem:[#allocation9 + $0x260] sm:$0xf]  ;;  %v2178_v32 = vld [vmem:[#allocation11 + $0x28] sm:$0xff] }
  0x7b   :  { %v2177_v33 = vld [vmem:[#allocation11 + $0x20] sm:$0xff] }
  0xb6   :  { %v318_v36 = vpop.f32.mrf.mxu0 }
  0xb7   :  { %v319_v37 = vadd.f32 %v318_v36, %v141_v34  ;;  %v331_v38 = vpop.f32.mrf.mxu1  ;;  %v1611_v34 = vld [vmem:[#allocation9 + $0x50] sm:$0xf] }
  0xb8   :  { %v332_v41 = vadd.f32 %v331_v38, %v142_v35  ;;  %v2088_v35 = vld [vmem:[#allocation9 + $0x58] sm:$0xf0]  ;;  %v1707_v36 = vld [vmem:[#allocation9 + $0x110] sm:$0xf]  ;;  %v1828_v38 = vor.u32 %v2142_v30, %v1827_v29 }
  0xb9   :  { %v361_v44 = vmax.f32 %v319_v37, 0.0  ;;  %v2112_v37 = vld [vmem:[#allocation9 + $0x118] sm:$0xf0]  ;;  %v1612_v42 = vor.u32 %v2088_v35, %v1611_v34  ;;  %v2179_v29 = vld [vmem:[#allocation11 + $0x30] sm:$0xff] }
  0xba   :  { %v362_v45 = vmax.f32 %v332_v41, 0.0  ;;  %v2139_v41 = vld [vmem:[#allocation9 + $0x1f0] sm:$0xf0]  ;;  %v1708_v43 = vor.u32 %v2112_v37, %v1707_v36  ;;  %v2188_v34 = vld [vmem:[#allocation11 + $0x78] sm:$0xff]  ;;  %v2186_v37 = vld [vmem:[#allocation11 + $0x68] sm:$0xff] }
  0xbb   :  { %v2436_v48 = vpack.c.bf16 %v361_v44, %v361_v44  ;;  %v1911_v44 = vld [vmem:[#allocation9 + $0x2a8] sm:$0xf]  ;;  %v1816_v51 = vor.u32 %v2139_v41, %v1815_v40  ;;  %v2176_v35 = vld [vmem:[#allocation11 + $0x18] sm:$0xff]  ;;  %v2175_v36 = vld [vmem:[#allocation11 + $0x10] sm:$0xff] }
  0xbc   :  { %v2438_v53 = vpack.c.bf16 %v362_v45, %v362_v45  ;;  %v2163_v45 = vld [vmem:[#allocation9 + $0x2b0] sm:$0xf0] }
  0xbd   :  { %1025 = vmatmul.bf16.vlgmr.msrb.gmra.mxu0 %v2436_v48  ;;  %v1912_v52 = vor.u32 %v2163_v45, %v1911_v44  ;;  %v2183_v40 = vld [vmem:[#allocation11 + $0x50] sm:$0xff]  ;;  %v497_v44 = vld [vmem:[%s2473_s5] sm:$0x7] }
  0xbe   :  { %v344_v56 = vpop.f32.mrf.mxu2  ;;  %1038 = vmatmul.bf16.vlgmr.msrb.gmra.mxu1 %v2438_v53  ;;  %v320_v59 = vpop.f32.mrf.mxu0  ;;  %1121 = vmatpush.bf16.msrb.mxu0 %v1660_v47  ;;  %v2085_v47 = vld [vmem:[#allocation9 + $0x40] sm:$0xf0]  ;;  %v2195_v41 = vld [vmem:[#allocation11 + $0xb0] sm:$0xff] }
  0xbf   :  { %v345_v57 = vadd.f32 %v344_v56, %v143_v46  ;;  %v357_v58 = vpop.f32.mrf.mxu3  ;;  %1134 = vmatpush.bf16.msrb.mxu1 %v1756_v50  ;;  %v333_v1 = vpop.f32.mrf.mxu1  ;;  %v1599_v46 = vld [vmem:[#allocation9 + $0x38] sm:$0xf]  ;;  %v2109_v50 = vld [vmem:[#allocation9 + $0x100] sm:$0xf0]  ;;  %v2160_v59 = vld [vmem:[#allocation9 + $0x298] sm:$0xf0] }
  0xc0   :  { %v358_v0 = vadd.f32 %v357_v58, %v144_v49  ;;  %v1695_v49 = vld [vmem:[#allocation9 + $0xf8] sm:$0xf]  ;;  %v1600_v56 = vor.u32 %v2085_v47, %v1599_v46  ;;  %v1899_v58 = vld [vmem:[#allocation9 + $0x290] sm:$0xf]  ;;  %v499_v47 = vperm.slane %v497_v44, 0 }
  0xc1   :  { %v363_v6 = vmax.f32 %v345_v57, 0.0  ;;  %v1696_v57 = vor.u32 %v2109_v50, %v1695_v49  ;;  %v1900_v1 = vor.u32 %v2160_v59, %v1899_v58  ;;  %v2181_v49 = vld [vmem:[#allocation11 + $0x40] sm:$0xff] }
  0xc2   :  { %v364_v9 = vmax.f32 %v358_v0, 0.0  ;;  %1122 = vmatpush.bf16.msrb.mxu0 %v1648_v60  ;;  %v1587_v60 = vld [vmem:[#allocation9 + $0x20] sm:$0xf]  ;;  %v1804_v0 = vor.u32 %v2136_v55, %v1803_v54 }
  0xc3   :  { %v2442_v11 = vpack.c.bf16 %v363_v6, %v363_v6  ;;  %1135 = vmatpush.bf16.msrb.mxu1 %v1744_v2  ;;  %v1791_v2 = vld [vmem:[#allocation9 + $0x1b8] sm:$0xf]  ;;  %v1588_v4 = vor.u32 %v2082_v61, %v1587_v60  ;;  %v2193_v50 = vld [vmem:[#allocation11 + $0xa0] sm:$0xff]  ;;  %v2190_v61 = vld [vmem:[#allocation11 + $0x88] sm:$0xff] }
  0xc4   :  { %v2444_v17 = vpack.c.bf16 %v364_v9, %v364_v9  ;;  %v1887_v6 = vld [vmem:[#allocation9 + $0x278] sm:$0xf]  ;;  %v2079_v9 = vld [vmem:[#allocation9 + $0x10] sm:$0xf0] }
  0xc5   :  { %1051 = vmatmul.bf16.vlgmr.msrb.gmra.mxu2 %v2442_v11  ;;  %v1888_v14 = vor.u32 %v2157_v7, %v1887_v6 }
  0xc6   :  { %1064 = vmatmul.bf16.vlgmr.msrb.gmra.mxu3 %v2444_v17  ;;  %v346_v24 = vpop.f32.mrf.mxu2  ;;  %1147 = vmatpush.bf16.msrb.mxu2 %v1852_v10  ;;  %v1671_v10 = vld [vmem:[#allocation9 + $0xc8] sm:$0xf] }
  0xc7   :  { %v359_v26 = vpop.f32.mrf.mxu3  ;;  %1160 = vmatpush.bf16.msrb.mxu3 %v1948_v12  ;;  %1123 = vmatpush.bf16.msrb.mxu0 %v1636_v13  ;;  %v2103_v12 = vld [vmem:[#allocation9 + $0xd0] sm:$0xf0]  ;;  %v1792_v13 = vor.u32 %v2133_v3, %v1791_v2  ;;  %v1876_v24 = vor.u32 %v2154_v21, %v1875_v20  ;;  %v2189_v2 = vld [vmem:[#allocation11 + $0x80] sm:$0xff]  ;;  %v501_v21 = vperm.slane %v497_v44, 2 }
  0xc8   :  { %1136 = vmatpush.bf16.msrb.mxu1 %v1732_v18  ;;  %v1576_v18 = vor.u32 %v2079_v9, %v1575_v8  ;;  %v1672_v19 = vor.u32 %v2103_v12, %v1671_v10  ;;  %v2127_v26 = vld [vmem:[#allocation9 + $0x190] sm:$0xf0] }
  0xca   :  { %1148 = vmatpush.bf16.msrb.mxu2 %v1840_v25  ;;  %v1767_v25 = vld [vmem:[#allocation9 + $0x188] sm:$0xf] }
  0xcb   :  { %1161 = vmatpush.bf16.msrb.mxu3 %v1936_v27  ;;  %1124 = vmatpush.bf16.msrb.mxu0 %v1624_v28  ;;  %v1863_v27 = vld [vmem:[#allocation9 + $0x248] sm:$0xf]  ;;  %v2151_v28 = vld [vmem:[#allocation9 + $0x250] sm:$0xf0]  ;;  %v1768_v30 = vor.u32 %v2127_v26, %v1767_v25 }
  0xcc   :  { %1137 = vmatpush.bf16.msrb.mxu1 %v1720_v31  ;;  %v1864_v31 = vor.u32 %v2151_v28, %v1863_v27 }
  0xcd   :  { %1077 = vmatmul.bf16.vlgmr.msra.gmra.mxu0 %v2436_v48 }
  0xce   :  { %1149 = vmatpush.bf16.msrb.mxu2 %v1828_v38  ;;  %1090 = vmatmul.bf16.vlgmr.msra.gmra.mxu1 %v2438_v53  ;;  %v2173_v38 = vld [vmem:[#allocation11] sm:$0xff] }
  0xcf   :  { %1162 = vmatpush.bf16.msrb.mxu3 %v1924_v39  ;;  %1125 = vmatpush.bf16.msrb.mxu0 %v1612_v42  ;;  %v2185_v39 = vld [vmem:[#allocation11 + $0x60] sm:$0xff]  ;;  %v2182_v42 = vld [vmem:[#allocation11 + $0x48] sm:$0xff] }
  0xd0   :  { %1138 = vmatpush.bf16.msrb.mxu1 %v1708_v43  ;;  %v2194_v43 = vld [vmem:[#allocation11 + $0xa8] sm:$0xff] }
  0xd2   :  { %1150 = vmatpush.bf16.msrb.mxu2 %v1816_v51 }
  0xd3   :  { %1163 = vmatpush.bf16.msrb.mxu3 %v1912_v52  ;;  %1126 = vmatpush.bf16.msrb.mxu0 %v1600_v56  ;;  %v2192_v52 = vld [vmem:[#allocation11 + $0x98] sm:$0xff] }
  0xd4   :  { %1139 = vmatpush.bf16.msrb.mxu1 %v1696_v57  ;;  %v2191_v57 = vld [vmem:[#allocation11 + $0x90] sm:$0xff] }
  0xd5   :  { %1103 = vmatmul.bf16.vlgmr.msra.gmra.mxu2 %v2442_v11 }
  0xd6   :  { %1116 = vmatmul.bf16.vlgmr.msra.gmra.mxu3 %v2444_v17  ;;  %1151 = vmatpush.bf16.msrb.mxu2 %v1804_v0 }
  0xd7   :  { %1164 = vmatpush.bf16.msrb.mxu3 %v1900_v1  ;;  %1127 = vmatpush.bf16.msrb.mxu0 %v1588_v4  ;;  %v500_v4 = vperm.slane %v497_v44, 1 }
  0xd8   :  { %1140 = vmatpush.bf16.msrb.mxu1 %v1684_v5 }
  0xda   :  { %1152 = vmatpush.bf16.msrb.mxu2 %v1792_v13 }
  0xdb   :  { %1165 = vmatpush.bf16.msrb.mxu3 %v1888_v14  ;;  %1128 = vmatpush.bf16.msrb.mxu0 %v1576_v18 }
  0xdc   :  { %1141 = vmatpush.bf16.msrb.mxu1 %v1672_v19 }
  0xde   :  { %1153 = vmatpush.bf16.msrb.mxu2 %v1780_v23  ;;  %1129 = vmatmul.bf16.vlgmr.msrb.gmra.mxu0 %v2436_v48  ;;  %v2187_v48 = vld [vmem:[#allocation11 + $0x70] sm:$0xff] }
  0xdf   :  { %1375 = vmatpush.bf16.msra.mxu0 %v2180_v22  ;;  %1166 = vmatpush.bf16.msrb.mxu3 %v1876_v24 }
  0xe0   :  { %1142 = vmatmul.bf16.vlgmr.msrb.gmra.mxu1 %v2438_v53  ;;  %v2174_v53 = vld [vmem:[#allocation11 + $0x8] sm:$0xff] }
  0xe1   :  { %1388 = vmatpush.bf16.msra.mxu1 %v2188_v34 }
  0xe2   :  { %1154 = vmatpush.bf16.msrb.mxu2 %v1768_v30 }
  0xe3   :  { %1376 = vmatpush.bf16.msra.mxu0 %v2179_v29  ;;  %1167 = vmatpush.bf16.msrb.mxu3 %v1864_v31 }
  0xe5   :  { %1155 = vmatmul.bf16.vlgmr.msrb.gmra.mxu2 %v2442_v11  ;;  %1389 = vmatpush.bf16.msra.mxu1 %v2187_v48  ;;  %v2184_v11 = vld [vmem:[#allocation11 + $0x58] sm:$0xff] }
  0xe6   :  { %1168 = vmatmul.bf16.vlgmr.msrb.gmra.mxu3 %v2444_v17  ;;  %v2196_v17 = vld [vmem:[#allocation11 + $0xb8] sm:$0xff] }
  0xe7   :  { %1377 = vmatpush.bf16.msra.mxu0 %v2178_v32  ;;  %1401 = vmatpush.bf16.msra.mxu2 %v2196_v17 }
  0xe9   :  { %1390 = vmatpush.bf16.msra.mxu1 %v2186_v37 }
  0xeb   :  { %1378 = vmatpush.bf16.msra.mxu0 %v2177_v33  ;;  %1402 = vmatpush.bf16.msra.mxu2 %v2195_v41  ;;  %v1415_v41 = vstv %s2468_s0 }
  0xed   :  { %1391 = vmatpush.bf16.msra.mxu1 %v2185_v39 }
  0xef   :  { %1379 = vmatpush.bf16.msra.mxu0 %v2176_v35  ;;  %1403 = vmatpush.bf16.msra.mxu2 %v2194_v43 }
  0xf1   :  { %1392 = vmatpush.bf16.msra.mxu1 %v2184_v11 }
  0xf3   :  { %1380 = vmatpush.bf16.msra.mxu0 %v2175_v36  ;;  %1404 = vmatpush.bf16.msra.mxu2 %v2193_v50 }
  0xf5   :  { %1393 = vmatpush.bf16.msra.mxu1 %v2183_v40 }
  0xf7   :  { %1381 = vmatpush.bf16.msra.mxu0 %v2174_v53  ;;  %1405 = vmatpush.bf16.msra.mxu2 %v2192_v52 }
  0xf9   :  { %1394 = vmatpush.bf16.msra.mxu1 %v2182_v42 }
  0xfb   :  { %1382 = vmatpush.bf16.msra.mxu0 %v2173_v38  ;;  %1406 = vmatpush.bf16.msra.mxu2 %v2191_v57  ;;  %v2209_v38 = vld [vmem:[%s2475_s7] ss:$0 sm:$0xff] }
  0xfd   :  { %1395 = vmatpush.bf16.msra.mxu1 %v2181_v49 }
  0xff   :  { %1407 = vmatpush.bf16.msra.mxu2 %v2190_v61 }
 0x103   :  { %1408 = vmatpush.bf16.msra.mxu2 %v2189_v2 }
 0x13a   :  { %v1026_v45 = vpop.f32.mrf.mxu0 }
 0x13b   :  { %v1039_v46 = vpop.f32.mrf.mxu1  ;;  %v1027_v51 = vadd.f32 %v1026_v45, %v499_v47 }
 0x13d   :  { %v1040_v56 = vadd.f32 %v1039_v46, %v1027_v51 }
 0x142   :  { %v1028_v54 = vpop.f32.mrf.mxu0 }
 0x143   :  { %v1041_v55 = vpop.f32.mrf.mxu1 }
 0x148   :  { %v1052_v58 = vpop.f32.mrf.mxu2 }
 0x149   :  { %v1053_v59 = vadd.f32 %v1052_v58, %v1040_v56  ;;  %v1065_v60 = vpop.f32.mrf.mxu3 }
 0x14a   :  { %v1078_v63 = vpop.f32.mrf.mxu0 }
 0x14b   :  { %v1066_v62 = vadd.f32 %v1065_v60, %v1053_v59  ;;  %v1091_v0 = vpop.f32.mrf.mxu1  ;;  %v1079_v7 = vadd.f32 %v1078_v63, %v500_v4 }
 0x14d   :  { %v1173_v1 = vmax.f32 %v1066_v62, 0.0  ;;  %v1092_v10 = vadd.f32 %v1091_v0, %v1079_v7 }
 0x14f   :  { %v1176_v3 = vpack.c.bf16 %v1173_v1, %v1173_v1 }
 0x150   :  { %v1054_v5 = vpop.f32.mrf.mxu2 }
 0x151   :  { %v1067_v6 = vpop.f32.mrf.mxu3  ;;  %1383 = vmatmul.bf16.vlgmr.msra.gmra.mxu0 %v1176_v3 }
 0x152   :  { %v1080_v8 = vpop.f32.mrf.mxu0 }
 0x153   :  { %v1093_v9 = vpop.f32.mrf.mxu1 }
 0x158   :  { %v1104_v12 = vpop.f32.mrf.mxu2 }
 0x159   :  { %v1105_v13 = vadd.f32 %v1104_v12, %v1092_v10  ;;  %v1117_v14 = vpop.f32.mrf.mxu3 }
 0x15b   :  { %v1118_v15 = vadd.f32 %v1117_v14, %v1105_v13  ;;  %v1130_v16 = vpop.f32.mrf.mxu0 }
 0x15c   :  { %v1131_v24 = vadd.f32 %v1130_v16, %v501_v21 }
 0x15d   :  { %v1174_v18 = vmax.f32 %v1118_v15, 0.0  ;;  %v1143_v19 = vpop.f32.mrf.mxu1 }
 0x15e   :  { %v1144_v27 = vadd.f32 %v1143_v19, %v1131_v24 }
 0x15f   :  { %v1177_v20 = vpack.c.bf16 %v1174_v18, %v1174_v18 }
 0x160   :  { %v1106_v22 = vpop.f32.mrf.mxu2 }
 0x161   :  { %v1119_v23 = vpop.f32.mrf.mxu3  ;;  %1396 = vmatmul.bf16.vlgmr.msra.gmra.mxu1 %v1177_v20 }
 0x163   :  { %v1132_v25 = vpop.f32.mrf.mxu0 }
 0x165   :  { %v1145_v26 = vpop.f32.mrf.mxu1 }
 0x168   :  { %v1156_v28 = vpop.f32.mrf.mxu2 }
 0x169   :  { %v1157_v29 = vadd.f32 %v1156_v28, %v1144_v27  ;;  %v1169_v30 = vpop.f32.mrf.mxu3 }
 0x16b   :  { %v1170_v31 = vadd.f32 %v1169_v30, %v1157_v29 }
 0x16d   :  { %v1175_v32 = vmax.f32 %v1170_v31, 0.0 }
 0x16f   :  { %v1178_v33 = vpack.c.bf16 %v1175_v32, %v1175_v32 }
 0x170   :  { %v1158_v34 = vpop.f32.mrf.mxu2 }
 0x171   :  { %v1171_v35 = vpop.f32.mrf.mxu3  ;;  %1409 = vmatmul.bf16.vlgmr.msra.gmra.mxu2 %v1178_v33 }
 0x1ce   :  { %v1384_v36 = vpop.f32.mrf.mxu0 }
 0x1cf   :  { %v1385_v39 = vadd.f32 %v2209_v38, %v1384_v36 }
 0x1d6   :  { %v1386_v48 = vpop.f32.mrf.mxu0 }
 0x1de   :  { %v1397_v53 = vpop.f32.mrf.mxu1 }
 0x1df   :  { %v1398_v11 = vadd.f32 %v1397_v53, %v1385_v39 }
 0x1e6   :  { %v1399_v37 = vpop.f32.mrf.mxu1 }
 0x1f4   :  { %v1410_v17 = vpop.f32.mrf.mxu2 }
 0x1f5   :  { %v1411_v40 = vadd.f32 %v1410_v17, %v1398_v11 }
 0x1f7   :  { %2210 = vtanh.f32 %v1411_v40 }
 0x1fc   :  { %v1412_v42 = vpop.f32.mrf.mxu2 }
 0x1fd   :  { %v2211_v43 = vpop.eup %2210 }
 0x1fe   :  { %v1416_v44 = vmul.f32 %v2211_v43, %v1415_v41 }
 0x200   :  { %1417 = vst [vmem:[#allocation12] sm:$0xff] %v1416_v44 }
 0x201   :  { %1428 = dma.vmem_to_hbm [thread:$0]  %s1424_s15, 128, %s1426_s18, [#allocation5]  }
 0x202   :  { %2362 = dma.done.wait [#allocation5], 128  }
 0x203   :  { %2363 = vsyncadd [#allocation5], 4294967168 }
 0x204   :  { %1433 = vsyncpa [#allocation4], 1 }
 0x205   :  { %1434 = vsyncpa [#allocation7], 1 }
 0x206   :  { %1435 = vsyncpa [#allocation10], 1 }
 0x207   :  { %1436 = vsyncpa [#allocation5], 1 }

</bundles_post_ra>
